<compile_context>
chip_gen: v6e
topology: v6e:2x2x1
jax: 0.10.0
libtpu: 0.0.40
codegen_flags: <defaults>
</compile_context>

<pallas_src>
import functools

import jax
import jax.numpy as jnp
from jax.experimental import pallas as pl
from jax.experimental.pallas import tpu as pltpu


# ----------------------------- Pallas kernel --------------------------------

def _fused_contrastive_kernel(x1_ref, x2_ref, w1_ref, b1_ref, w2_ref, b2_ref,
                              out_ref, acc_ref, *, inv_temp, batch):
    """K-tiled fused encoder (both views) + contrastive logits.

    Grid axis 0 tiles the D_in reduction dimension ('arbitrary').

    x1, x2 : (B, tk)      f32  tiles of the flattened inputs (cast in-kernel)
    w1     : (tk, H)      bf16 tile of layer-1 weights
    b1     : (1, H)       f32
    w2     : (H, D_out)   bf16 (resident; constant index_map -> fetched once)
    b2     : (1, D_out)   f32
    out    : (B, B)       f32  logits = (z1 @ z2.T) / T   (written last step)
    acc    : (2B, H)      f32  VMEM accumulator for layer-1
    """
    k = pl.program_id(0)

    @pl.when(k == 0)
    def _init():
        acc_ref[...] = jnp.zeros_like(acc_ref)

    # Stack the two views' K-tiles in VMEM and cast to bf16 on the VPU; bf16
    # MXU inputs, f32 accumulation.
    x = jnp.concatenate([x1_ref[...], x2_ref[...]], axis=0).astype(jnp.bfloat16)
    acc_ref[...] += jnp.dot(x, w1_ref[...], preferred_element_type=jnp.float32)

    @pl.when(k == pl.num_programs(0) - 1)
    def _epilogue():
        # Layer 1 bias + ReLU in f32 (portable: v5e VPU has no bf16).
        # TODO(synk): on v6e/v7x this block could stay bf16 to halve vreg traffic.
        h = jnp.maximum(acc_ref[...] + b1_ref[...], 0.0)

        # Layer 2: bf16 MXU inputs, f32 accumulate, f32 bias.
        z = jnp.dot(h.astype(jnp.bfloat16), w2_ref[...],
                    preferred_element_type=jnp.float32) + b2_ref[...]

        z1 = z[:batch, :]
        z2 = z[batch:, :]

        # L2-normalize rows (matches F.normalize(z, dim=1) up to eps handling).
        # 1/T is folded into z1's scale -> no (B, B) multiply on the logits.
        s1 = jax.lax.rsqrt(jnp.sum(z1 * z1, axis=-1, keepdims=True) + 1e-12) * inv_temp
        s2 = jax.lax.rsqrt(jnp.sum(z2 * z2, axis=-1, keepdims=True) + 1e-12)
        z1b = (z1 * s1).astype(jnp.bfloat16)
        z2b = (z2 * s2).astype(jnp.bfloat16)

        # Contract last dims directly (no explicit transpose of z2).
        logits = jax.lax.dot_general(
            z1b, z2b,
            dimension_numbers=(((1,), (1,)), ((), ())),
            preferred_element_type=jnp.float32,
        )
        out_ref[...] = logits.astype(out_ref.dtype)


# ------------------------------ JAX wrappers ---------------------------------

def prepare_params(w1, b1, w2, b2):
    """One-time conversion of encoder params to their kernel dtypes."""
    return (w1.astype(jnp.bfloat16),
            b1.astype(jnp.float32).reshape(1, -1),
            w2.astype(jnp.bfloat16),
            b2.astype(jnp.float32).reshape(1, -1))


def base_model_forward(x1, x2, params, temperature=0.2, block_k=256):
    """BaseModel.forward equivalent: returns (logits, labels)."""
    B = x1.shape[0]
    w1b, b1f, w2b, b2f = params
    d_in, hidden = w1b.shape
    d_out = w2b.shape[1]

    # Flatten (free bitcast-style reshape); dtype cast happens in-kernel.
    x1f = x1.reshape(B, -1)
    x2f = x2.reshape(B, -1)
    assert x1f.shape[1] == d_in and d_in % block_k == 0
    nk = d_in // block_k

    kernel = functools.partial(
        _fused_contrastive_kernel, inv_temp=1.0 / temperature, batch=B)

    logits = pl.pallas_call(
        kernel,
        out_shape=jax.ShapeDtypeStruct((B, B), jnp.float32),
        grid_spec=pltpu.PrefetchScalarGridSpec(
            num_scalar_prefetch=0,
            grid=(nk,),                                   # K reduction axis (last)
            in_specs=[
                pl.BlockSpec((B, block_k), lambda k: (0, k)),   # x1 K-tile
                pl.BlockSpec((B, block_k), lambda k: (0, k)),   # x2 K-tile
                pl.BlockSpec((block_k, hidden), lambda k: (k, 0)),  # w1 K-tile
                pl.BlockSpec((1, hidden), lambda k: (0, 0)),    # b1 (resident)
                pl.BlockSpec((hidden, d_out), lambda k: (0, 0)),  # w2 (resident)
                pl.BlockSpec((1, d_out), lambda k: (0, 0)),     # b2 (resident)
            ],
            out_specs=pl.BlockSpec((B, B), lambda k: (0, 0)),   # written last step
            scratch_shapes=[pltpu.VMEM((2 * B, hidden), jnp.float32)],
        ),
        compiler_params=pltpu.CompilerParams(
            dimension_semantics=("arbitrary",),
            # Explicit budget: safely under v7x's 32 MiB scoped / 64 MiB VMEM.
            vmem_limit_bytes=32 << 20,
        ),
    )(x1f, x2f, w1b, b1f, w2b, b2f)

    labels = jnp.arange(B, dtype=jnp.int32)
    return logits, labels


# --------------------------------- main --------------------------------------

if __name__ == "__main__":
    # Small shapes consistent with an image-encoder input (NCHW).
    B, C, H, W = 8, 4, 16, 16
    D_IN = C * H * W          # 1024
    HIDDEN = 128              # MLP head hidden width
    FEATURE_DIM = 64          # args.feature_dim (low_dim)
    TEMP = 0.2

    key = jax.random.PRNGKey(0)
    k_x1, k_x2, k_w1, k_w2 = jax.random.split(key, 4)

    x1 = jax.random.normal(k_x1, (B, C, H, W), dtype=jnp.float32)
    x2 = jax.random.normal(k_x2, (B, C, H, W), dtype=jnp.float32)

    # Deterministic encoder parameters (synthetic init), converted once.
    w1 = jax.random.normal(k_w1, (D_IN, HIDDEN), dtype=jnp.float32) * (1.0 / D_IN ** 0.5)
    b1 = jnp.zeros((1, HIDDEN), dtype=jnp.float32)
    w2 = jax.random.normal(k_w2, (HIDDEN, FEATURE_DIM), dtype=jnp.float32) * (1.0 / HIDDEN ** 0.5)
    b2 = jnp.zeros((1, FEATURE_DIM), dtype=jnp.float32)
    params = prepare_params(w1, b1, w2, b2)

    logits, labels = base_model_forward(x1, x2, params, temperature=TEMP)
    jax.block_until_ready((logits, labels))

    # Plain-JAX reference mimicking the kernel's dtype path
    # (bf16 matmul inputs, f32 accumulation, f32 elementwise, bf16 logits dot,
    #  1/T folded into z1's normalization scale).
    w1b, b1f, w2b, b2f = params

    def ref_encode(xf):
        h = jnp.dot(xf.astype(jnp.bfloat16), w1b,
                    preferred_element_type=jnp.float32) + b1f
        h = jnp.maximum(h, 0.0)
        z = jnp.dot(h.astype(jnp.bfloat16), w2b,
                    preferred_element_type=jnp.float32) + b2f
        return z

    z1_ref = ref_encode(x1.reshape(B, -1))
    z2_ref = ref_encode(x2.reshape(B, -1))
    s1 = jax.lax.rsqrt(jnp.sum(z1_ref * z1_ref, -1, keepdims=True) + 1e-12) * (1.0 / TEMP)
    s2 = jax.lax.rsqrt(jnp.sum(z2_ref * z2_ref, -1, keepdims=True) + 1e-12)
    logits_ref = jnp.dot((z1_ref * s1).astype(jnp.bfloat16),
                         (z2_ref * s2).astype(jnp.bfloat16).T,
                         preferred_element_type=jnp.float32)

    assert logits.shape == (B, B)
    assert labels.shape == (B,)
    assert labels.dtype == jnp.int32
    assert bool(jnp.all(labels == jnp.arange(B)))
    assert jnp.allclose(logits, logits_ref, atol=2e-2, rtol=2e-2)

    print("KERNEL_OK")
</pallas_src>

<mosaic_0001>
module attributes {stable_mosaic.version = 11 : i64} {
  func.func @_fused_contrastive_kernel(%arg0: i32, %arg1: memref<8x256xf32, #tpu.memory_space<vmem>>, %arg2: memref<8x256xf32, #tpu.memory_space<vmem>>, %arg3: memref<256x128xbf16, #tpu.memory_space<vmem>>, %arg4: memref<1x128xf32, #tpu.memory_space<vmem>>, %arg5: memref<128x64xbf16, #tpu.memory_space<vmem>>, %arg6: memref<1x64xf32, #tpu.memory_space<vmem>>, %arg7: memref<8x8xf32, #tpu.memory_space<vmem>>, %arg8: memref<16x128xf32, #tpu.memory_space<vmem>>) attributes {dimension_semantics = [#tpu.dimension_semantics<arbitrary>], iteration_bounds = array<i64: 4>, scalar_prefetch = 0 : i64, scratch_operands = 1 : i64, tpu.core_type = #tpu.core_type<tc>, window_params = [{transform_indices = @transform_0, window_bounds = array<i64: 8, 256>}, {transform_indices = @transform_1, window_bounds = array<i64: 8, 256>}, {transform_indices = @transform_2, window_bounds = array<i64: 256, 128>}, {pipeline_mode = #tpu.pipeline_mode<synchronous>, transform_indices = @transform_3, window_bounds = array<i64: 1, 128>}, {pipeline_mode = #tpu.pipeline_mode<synchronous>, transform_indices = @transform_4, window_bounds = array<i64: 128, 64>}, {pipeline_mode = #tpu.pipeline_mode<synchronous>, transform_indices = @transform_5, window_bounds = array<i64: 1, 64>}, {pipeline_mode = #tpu.pipeline_mode<synchronous>, transform_indices = @transform_6, window_bounds = array<i64: 8, 8>}]} {
    %c0_i32 = arith.constant 0 : i32
    %0 = arith.cmpi eq, %arg0, %c0_i32 : i32
    %1 = arith.extui %0 : i1 to i32
    %c0_i32_0 = arith.constant 0 : i32
    %2 = arith.cmpi ne, %1, %c0_i32_0 : i32
    scf.if %2 {
      %cst_11 = arith.constant 0.000000e+00 : f32
      %15 = vector.broadcast %cst_11 : f32 to vector<16x128xf32>
      %c0_12 = arith.constant 0 : index
      %c0_13 = arith.constant 0 : index
      %16 = vector.load %arg8[%c0_12, %c0_13] : memref<16x128xf32, #tpu.memory_space<vmem>>, vector<16x128xf32>
      tpu.vector_store %arg8[%c0_12, %c0_13], %15 {strides = array<i32>} : memref<16x128xf32, #tpu.memory_space<vmem>>, vector<16x128xf32>,
    } else {
    }
    %c0 = arith.constant 0 : index
    %c0_1 = arith.constant 0 : index
    %3 = vector.load %arg1[%c0, %c0_1] : memref<8x256xf32, #tpu.memory_space<vmem>>, vector<8x256xf32>
    %c0_2 = arith.constant 0 : index
    %c0_3 = arith.constant 0 : index
    %4 = vector.load %arg2[%c0_2, %c0_3] : memref<8x256xf32, #tpu.memory_space<vmem>>, vector<8x256xf32>
    %5 = tpu.concatenate %3, %4 in 0 : vector<8x256xf32>, vector<8x256xf32> -> vector<16x256xf32>
    %6 = arith.truncf %5 : vector<16x256xf32> to vector<16x256xbf16>
    %c0_4 = arith.constant 0 : index
    %c0_5 = arith.constant 0 : index
    %7 = vector.load %arg8[%c0_4, %c0_5] : memref<16x128xf32, #tpu.memory_space<vmem>>, vector<16x128xf32>
    %c0_6 = arith.constant 0 : index
    %c0_7 = arith.constant 0 : index
    %8 = vector.load %arg3[%c0_6, %c0_7] : memref<256x128xbf16, #tpu.memory_space<vmem>>, vector<256x128xbf16>
    %cst = arith.constant dense<0.000000e+00> : vector<16x128xf32>
    %9 = tpu.matmul %6, %8, %cst {dimension_numbers = #tpu.dot_dimension_numbers<[1], [0], [0], [1], [0, 0, 1, 1], [], []>} : vector<16x256xbf16>, vector<256x128xbf16>, vector<16x128xf32> -> vector<16x128xf32>
    %10 = arith.addf %7, %9 : vector<16x128xf32>
    %c0_8 = arith.constant 0 : index
    %c0_9 = arith.constant 0 : index
    %11 = vector.load %arg8[%c0_8, %c0_9] : memref<16x128xf32, #tpu.memory_space<vmem>>, vector<16x128xf32>
    tpu.vector_store %arg8[%c0_8, %c0_9], %10 {strides = array<i32>} : memref<16x128xf32, #tpu.memory_space<vmem>>, vector<16x128xf32>,
    %c3_i32 = arith.constant 3 : i32
    %12 = arith.cmpi eq, %arg0, %c3_i32 : i32
    %13 = arith.extui %12 : i1 to i32
    %c0_i32_10 = arith.constant 0 : i32
    %14 = arith.cmpi ne, %13, %c0_i32_10 : i32
    scf.if %14 {
      %c0_11 = arith.constant 0 : index
      %c0_12 = arith.constant 0 : index
      %15 = vector.load %arg8[%c0_11, %c0_12] : memref<16x128xf32, #tpu.memory_space<vmem>>, vector<16x128xf32>
      %c0_13 = arith.constant 0 : index
      %c0_14 = arith.constant 0 : index
      %16 = vector.load %arg4[%c0_13, %c0_14] : memref<1x128xf32, #tpu.memory_space<vmem>>, vector<1x128xf32>
      %17 = vector.broadcast %16 : vector<1x128xf32> to vector<16x128xf32>
      %18 = arith.addf %15, %17 : vector<16x128xf32>
      %cst_15 = arith.constant 0.000000e+00 : f32
      %19 = vector.broadcast %cst_15 : f32 to vector<16x128xf32>
      %20 = arith.maximumf %18, %19 : vector<16x128xf32>
      %21 = arith.truncf %20 : vector<16x128xf32> to vector<16x128xbf16>
      %c0_16 = arith.constant 0 : index
      %c0_17 = arith.constant 0 : index
      %22 = vector.load %arg5[%c0_16, %c0_17] : memref<128x64xbf16, #tpu.memory_space<vmem>>, vector<128x64xbf16>
      %cst_18 = arith.constant dense<0.000000e+00> : vector<16x64xf32>
      %23 = tpu.matmul %21, %22, %cst_18 {dimension_numbers = #tpu.dot_dimension_numbers<[1], [0], [0], [1], [0, 0, 1, 1], [], []>} : vector<16x128xbf16>, vector<128x64xbf16>, vector<16x64xf32> -> vector<16x64xf32>
      %c0_19 = arith.constant 0 : index
      %c0_20 = arith.constant 0 : index
      %24 = vector.load %arg6[%c0_19, %c0_20] : memref<1x64xf32, #tpu.memory_space<vmem>>, vector<1x64xf32>
      %25 = vector.broadcast %24 : vector<1x64xf32> to vector<16x64xf32>
      %26 = arith.addf %23, %25 : vector<16x64xf32>
      %27 = vector.extract_strided_slice %26 {offsets = [0, 0], sizes = [8, 64], strides = [1, 1]} : vector<16x64xf32> to vector<8x64xf32>
      %28 = vector.extract_strided_slice %26 {offsets = [8, 0], sizes = [8, 64], strides = [1, 1]} : vector<16x64xf32> to vector<8x64xf32>
      %29 = arith.mulf %27, %27 : vector<8x64xf32>
      %cst_21 = arith.constant dense<0.000000e+00> : vector<8xf32>
      %30 = vector.multi_reduction <add>, %29, %cst_21 [1] : vector<8x64xf32> to vector<8xf32>
      %31 = vector.shape_cast %30 : vector<8xf32> to vector<8x1xf32>
      %cst_22 = arith.constant 9.99999996E-13 : f32
      %32 = vector.broadcast %cst_22 : f32 to vector<8x1xf32>
      %33 = arith.addf %31, %32 : vector<8x1xf32>
      %34 = math.rsqrt %33 : vector<8x1xf32>
      %cst_23 = arith.constant 5.000000e+00 : f32
      %35 = vector.broadcast %cst_23 : f32 to vector<8x1xf32>
      %36 = arith.mulf %34, %35 : vector<8x1xf32>
      %37 = arith.mulf %28, %28 : vector<8x64xf32>
      %cst_24 = arith.constant dense<0.000000e+00> : vector<8xf32>
      %38 = vector.multi_reduction <add>, %37, %cst_24 [1] : vector<8x64xf32> to vector<8xf32>
      %39 = vector.shape_cast %38 : vector<8xf32> to vector<8x1xf32>
      %cst_25 = arith.constant 9.99999996E-13 : f32
      %40 = vector.broadcast %cst_25 : f32 to vector<8x1xf32>
      %41 = arith.addf %39, %40 : vector<8x1xf32>
      %42 = math.rsqrt %41 : vector<8x1xf32>
      %43 = vector.broadcast %36 : vector<8x1xf32> to vector<8x64xf32>
      %44 = arith.mulf %27, %43 : vector<8x64xf32>
      %45 = arith.truncf %44 : vector<8x64xf32> to vector<8x64xbf16>
      %46 = vector.broadcast %42 : vector<8x1xf32> to vector<8x64xf32>
      %47 = arith.mulf %28, %46 : vector<8x64xf32>
      %48 = arith.truncf %47 : vector<8x64xf32> to vector<8x64xbf16>
      %cst_26 = arith.constant dense<0.000000e+00> : vector<8x8xf32>
      %49 = tpu.matmul %45, %48, %cst_26 {dimension_numbers = #tpu.dot_dimension_numbers<[1], [1], [0], [0], [0, 0, 1, 0], [], []>} : vector<8x64xbf16>, vector<8x64xbf16>, vector<8x8xf32> -> vector<8x8xf32>
      %c0_27 = arith.constant 0 : index
      %c0_28 = arith.constant 0 : index
      %50 = vector.load %arg7[%c0_27, %c0_28] : memref<8x8xf32, #tpu.memory_space<vmem>>, vector<8x8xf32>
      tpu.vector_store %arg7[%c0_27, %c0_28], %49 {strides = array<i32>} : memref<8x8xf32, #tpu.memory_space<vmem>>, vector<8x8xf32>,
    } else {
    }
    return
  }
  func.func @transform_0(%arg0: i32) -> (i32, i32) {
    %c0_i32 = arith.constant 0 : i32
    %c0_i32_0 = arith.constant 0 : i32
    return %c0_i32, %arg0 : i32, i32
  }
  func.func @transform_1(%arg0: i32) -> (i32, i32) {
    %c0_i32 = arith.constant 0 : i32
    %c0_i32_0 = arith.constant 0 : i32
    return %c0_i32, %arg0 : i32, i32
  }
  func.func @transform_2(%arg0: i32) -> (i32, i32) {
    %c0_i32 = arith.constant 0 : i32
    %c0_i32_0 = arith.constant 0 : i32
    return %arg0, %c0_i32 : i32, i32
  }
  func.func @transform_3(%arg0: i32) -> (i32, i32) {
    %c0_i32 = arith.constant 0 : i32
    %c0_i32_0 = arith.constant 0 : i32
    %c0_i32_1 = arith.constant 0 : i32
    return %c0_i32, %c0_i32_0 : i32, i32
  }
  func.func @transform_4(%arg0: i32) -> (i32, i32) {
    %c0_i32 = arith.constant 0 : i32
    %c0_i32_0 = arith.constant 0 : i32
    %c0_i32_1 = arith.constant 0 : i32
    return %c0_i32, %c0_i32_0 : i32, i32
  }
  func.func @transform_5(%arg0: i32) -> (i32, i32) {
    %c0_i32 = arith.constant 0 : i32
    %c0_i32_0 = arith.constant 0 : i32
    %c0_i32_1 = arith.constant 0 : i32
    return %c0_i32, %c0_i32_0 : i32, i32
  }
  func.func @transform_6(%arg0: i32) -> (i32, i32) {
    %c0_i32 = arith.constant 0 : i32
    %c0_i32_0 = arith.constant 0 : i32
    %c0_i32_1 = arith.constant 0 : i32
    return %c0_i32, %c0_i32_0 : i32, i32
  }
}

</mosaic_0001>

<bundles_post_ra>
// kernel: tpu_custom_call.1
= control target key start
LH: loop header
LB: loop body
LE: loop exit
PB: predicated region body
PF: predicated region fallthrough
CT: control target
= control target key end

     0   :  { %11 = vsyncpa [#allocation4], 0  ;;  %s1382_s0 = inlined_call_operand.vmem [shape: f32[8,1024], index: 0, kind: input, shape index: {}]   ;;  %s1383_s1 = inlined_call_operand.hbm [shape: f32[8,1024], index: 1, kind: input, shape index: {}]   ;;  %s1384_s2 = inlined_call_operand.hbm [shape: bf16[1024,128], index: 2, kind: input, shape index: {}]   ;;  %s1385_s3 = inlined_call_operand.vmem [shape: f32[1,128], index: 3, kind: input, shape index: {}]   ;;  %s1386_s4 = inlined_call_operand.vmem [shape: bf16[128,64], index: 4, kind: input, shape index: {}]   ;;  %s1387_s5 = inlined_call_operand.vmem [shape: f32[1,64], index: 5, kind: input, shape index: {}]   ;;  %s1388_s6 = inlined_call_operand.hbm [shape: f32[8,8], index: 6, kind: output, shape index: {}]  }
   0x1   :  { %13 = vsyncpa [#allocation4 + $0x1], 0 }
   0x2   :  { %14 = vsyncpa [#allocation7], 0 }
   0x3   :  { %16 = vsyncpa [#allocation7 + $0x1], 0 }
   0x4   :  { %17 = vsyncpa [#allocation5], 0  ;;  %s1155_s21 = smov 0   ;;  %s1157_s22 = smov 0  }
   0x5   :  { %s1159_s23 = smov 0   ;;  %s1161_s24 = smov 0  }
   0x6 LB: > { %s1174_s25 = sadd.s32 4294967295, %s1110_s24   ;;  %s1177_s26 = sadd.s32 1, %s1110_s24   ;;  %s1110_s24 = sphi %s1161_s24, %s1399_s24   ;;  %s1106_s23 = sphi %s1159_s23, %s1398_s23   ;;  %s1102_s22 = sphi %s1157_s22, %s1397_s22   ;;  %s1098_s21 = sphi %s1155_s21, %s1396_s21  }
   0x7   : > { %s53_s27 = ssub.s32 %s1110_s24, %s1177_s26  ;;  %s56_s28 = sadd.s32 1, %s1106_s23 }
   0x8   : > { %p54_p0 = scmp.eq.s32.totalorder %s53_s27, 0  ;;  %p63_p1 = scmp.ne.s32.totalorder %s1106_s23, %s1102_s22 }
   0x9   : > { %p64_p2 = scmp.eq.s32.totalorder %s1110_s24, 0  ;;  %p69_p3 = scmp.ne.s32.totalorder %s1102_s22, %s1098_s21 }
   0xa   : > { %s1187_s29 = scalar_select %p54_p0, %s1106_s23, %s56_s28  }
   0xb   : > { %p65_p4 = por %p64_p2, %p63_p1  ;;  %p70_p5 = scmp.eq.s32.totalorder %s1174_s25, 0 }
   0xc   : > { %p919_p6 = scmp.lt.s32.totalorder %s1110_s24, 4  ;;  %s1196_s7 = sand.u32 1, %s1106_s23  }
   0xd   : > { %p1191_p7 = por %p70_p5, %p69_p3  ;;  %s799_s8 = sshll.u32 %s1196_s7, 4 }
   0xe   : > { %s843_s9 = sshll.u32 %s1110_s24, 8  ;;  %s225_s13 = scalar_lea.vmem [#allocation3], %s799_s8 }
   0xf   : > { %s1390_s30 = scalar_select %p1191_p7, 1, 0 }
  0x10   : > { %s1203_s12 = scalar_lea.hbm %s1383_s1, %s843_s9  ;;  %s233_s14 = sshll.u32 %s225_s13, 4  ;;  %s1205_s14 = int_to_ptr.vmem [resolvable:$true] %s233_s14 }
  0x11   : > { %p1207_p8 = pnand %p919_p6, %p65_p4  ;;  %s222_s16 = scalar_lea.sflag [#allocation4], %s1196_s7 }
  0x12   : > { %s988_s17 = scalar_lea.hbm %s1203_s12, 256  ;;  %s993_s20 = scalar_lea.hbm %s1383_s1, 1024 }
  0x13   : > { %p989_p11 = scmp.ne.s32.totalorder %s1203_s12, %s988_s17  ;;  %p990_p12 = pneg %p1207_p8 }
  0x14   : > { %p994_p1 = scmp.lt.s32.totalorder %s1203_s12, %s1383_s1  ;;  %p995_p2 = scmp.lt.s32.totalorder %s993_s20, %s988_s17 }
  0x15   : > { %p991_p13 = pnand %p990_p12, %p989_p11 }
  0x16   : > { %p996_p3 = por %p995_p2, %p994_p1 }
  0x17   : > { %p992_p0 = pneg %p991_p13 }
  0x19   : > { %p997_p4 = pnand %p996_p3, %p992_p0 }
  0x1b   : > { %1000 = shalt.err (!%p997_p4)
}
  0x1c   : > { %s1001_s28 = scalar_lea.vmem %s1205_s14, 256  ;;  %s1112_s8 = smov [#allocation3]  }
  0x1d   : > { %p1002_p5 = scmp.ne.s32.totalorder %s1205_s14, %s1001_s28  ;;  %s1006_s9 = sshll.u32 %s1112_s8, 4  ;;  %s1007_s9 = int_to_ptr.vmem [resolvable:$false] %s1006_s9 }
  0x1e   : > { %s1008_s10 = scalar_lea.vmem %s1007_s9, 512  ;;  %p1009_p13 = scmp.lt.s32.totalorder %s1205_s14, %s1007_s9 }
  0x1f   : > { %p1004_p6 = pnand %p1002_p5, %p990_p12  ;;  %p1010_p9 = scmp.lt.s32.totalorder %s1008_s10, %s1001_s28 }
  0x21   : > { %p1005_p11 = pneg %p1004_p6  ;;  %p1011_p10 = por %p1010_p9, %p1009_p13 }
  0x23   : > { %p1012_p1 = pnand %p1011_p10, %p1005_p11 }
  0x25   : > { %1015 = shalt.err (!%p1012_p1)
}
  0x26   : > { %915 = dma.hbm_to_vmem [thread:$0]  (!%p1207_p8), %s1203_s12, 256, %s1205_s14, %s222_s16  }
  0x27   : > { %p1392_p0 = scmp.lt.s32.totalorder %s1110_s24, 5  ;;  %p1393_p2 = scmp.ge.s32.totalorder %s1110_s24, 1 }
  0x28   : > { %s802_s13 = sshll.u32 %s1196_s7, 7  ;;  %s844_s17 = sshll.u32 %s1110_s24, 11 }
  0x29   : > { %p1242_p3 = pnand %p1393_p2, %p1392_p0  ;;  %s1251_s20 = scalar_lea.hbm %s1384_s2, %s844_s17 }
  0x2a   : > { %s244_s21 = scalar_lea.vmem [#allocation6], %s802_s13  ;;  %s241_s12 = scalar_lea.sflag [#allocation7], %s1196_s7 }
  0x2b   : > { %s251_s27 = sshll.u32 %s244_s21, 4  ;;  %s1016_s14 = scalar_lea.hbm %s1251_s20, 2048  ;;  %s1253_s27 = int_to_ptr.vmem [resolvable:$true] %s251_s27 }
  0x2c   : > { %p1017_p9 = scmp.ne.s32.totalorder %s1251_s20, %s1016_s14  ;;  %s1021_s28 = scalar_lea.hbm %s1384_s2, 8192 }
  0x2d   : > { %p1022_p5 = scmp.lt.s32.totalorder %s1251_s20, %s1384_s2  ;;  %p1023_p6 = scmp.lt.s32.totalorder %s1021_s28, %s1016_s14 }
  0x2e   : > { %p1019_p10 = pnand %p1017_p9, %p990_p12 }
  0x2f   : > { %p1024_p11 = por %p1023_p6, %p1022_p5 }
  0x30   : > { %p1020_p4 = pneg %p1019_p10 }
  0x32   : > { %p1025_p13 = pnand %p1024_p11, %p1020_p4 }
  0x34   : > { %1028 = shalt.err (!%p1025_p13)
}
  0x35   : > { %s1029_s10 = scalar_lea.vmem %s1253_s27, 2048  ;;  %s1113_s13 = smov [#allocation6]  }
  0x36   : > { %p1030_p1 = scmp.ne.s32.totalorder %s1253_s27, %s1029_s10  ;;  %s1034_s17 = sshll.u32 %s1113_s13, 4  ;;  %s1035_s17 = int_to_ptr.vmem [resolvable:$false] %s1034_s17 }
  0x37   : > { %s1036_s18 = scalar_lea.vmem %s1035_s17, 4096  ;;  %p1037_p9 = scmp.lt.s32.totalorder %s1253_s27, %s1035_s17 }
  0x38   : > { %p1032_p0 = pnand %p1030_p1, %p990_p12  ;;  %p1038_p10 = scmp.lt.s32.totalorder %s1036_s18, %s1029_s10 }
  0x3a   : > { %p1033_p2 = pneg %p1032_p0  ;;  %p1039_p7 = por %p1038_p10, %p1037_p9 }
  0x3c   : > { %p1040_p5 = pnand %p1039_p7, %p1033_p2 }
  0x3e   : > { %1043 = shalt.err (!%p1040_p5)
}
  0x3f   : > { %s1114_s19 = smov 64   ;;  %s1115_s21 = smov 4  }
  0x40   : > { %918 = dma.hbm_to_vmem [thread:$0]  (!%p1207_p8), %s1251_s20, 2048, %s1253_s27, %s241_s12, %s1114_s19, %s1114_s19, %s1115_s21  }
  0x41   : > { %263 = sbr.rel (%p1242_p3) target bundleno = 935 (0x3a7), region = 44  ;;  %s265_s14 = sand.u32 (!%p1242_p3), 1, %s1102_s22  }
  0x42   : > { %s806_s24 = sshll.u32 (!%p1242_p3), %s265_s14, 4  ;;  %s266_s16 = scalar_lea.sflag (!%p1242_p3), [#allocation4], %s265_s14 }
  0x43   : > { %s1283_s28 = scalar_lea.vmem (!%p1242_p3), [#allocation3], %s806_s24  ;;  %p1395_p7 = scmp.ne.s32.totalorder (!%p1242_p3), %s1390_s30, 0 }
  0x46   : > { %1085 = dma.done.wait (%p1395_p7), %s266_s16, 256  }
  0x47   : > { %1087 = vsyncadd (%p1395_p7), %s266_s16, 4294967040  ;;  %s807_s8 = sshll.u32 %s265_s14, 7  ;;  %s275_s15 = scalar_lea.sflag [#allocation7], %s265_s14 }
  0x48   : > { %s1289_s7 = scalar_lea.vmem [#allocation6], %s807_s8 }
  0x49   : > { %1089 = dma.done.wait (%p1395_p7), %s275_s15, 2048  }
  0x4a   : > { %1091 = vsyncadd (%p1395_p7), %s275_s15, 4294965248  ;;  %s808_s11 = sshll.u32 %s1174_s25, 1  ;;  %p810_p12 = scmp.ne.s32.totalorder %s1174_s25, 0 }
  0x4b   : > { %p313_p8 = scmp.lt.s32.totalorder %s808_s11, 7 }
  0x4c   : > { %324 = sbr.rel (%p810_p12) target bundleno = 83 (0x53), region = 56 }
  0x4d   : > { %s1401_s11 = smov (!%p313_p8, %s808_s11), 7 }
  0x4e   : > { %s809_s20 = sshll.u32 %s1401_s11, 3 }
  0x4f   : > { %s1299_s9 = scalar_lea.vmem %s1382_s0, %s809_s20 }
  0x51   : > { %v1116_v0 = vmov 0.0  }
  0x52   : > { %325 = vst [vmem:[#allocation2] sm:$0xff] %v1116_v0  ;;  %326 = vst [vmem:[#allocation2 + $0x8] sm:$0xff] %v1116_v0 }
  0x53 PF: > { %v960_v1 = vld [vmem:[%s1289_s7 + $0x78] sm:$0xff]   ;;  %v962_v3 = vld [vmem:[%s1289_s7 + $0x70] sm:$0xff]   ;;  %v964_v5 = vld [vmem:[%s1289_s7 + $0x68] sm:$0xff]   ;;  %p827_p3 = scmp.ne.s32.totalorder %s1174_s25, 3 }
  0x54   : > { %v961_v2 = vld [vmem:[%s1289_s7 + $0x38] sm:$0xff]   ;;  %845 = vmatprep.subr.bf16.mxu0 %v960_v1  ;;  %v963_v4 = vld [vmem:[%s1289_s7 + $0x30] sm:$0xff]   ;;  %v965_v6 = vld [vmem:[%s1289_s7 + $0x28] sm:$0xff]  }
  0x55   : > { %846 = vmatpush3.bf16.msra.mxu0 %v961_v2  ;;  %v966_v7 = vld [vmem:[%s1289_s7 + $0x60] sm:$0xff]   ;;  %v968_v9 = vld [vmem:[%s1289_s7 + $0x58] sm:$0xff]   ;;  %v970_v11 = vld [vmem:[%s1289_s7 + $0x50] sm:$0xff]  }
  0x56   : > { %847 = vmatprep.subr.bf16.mxu0 %v962_v3  ;;  %v967_v8 = vld [vmem:[%s1289_s7 + $0x20] sm:$0xff]   ;;  %v969_v10 = vld [vmem:[%s1289_s7 + $0x18] sm:$0xff]   ;;  %v971_v15 = vld [vmem:[%s1289_s7 + $0x10] sm:$0xff]  }
  0x57   : > { %v328_v12 = vld [vmem:[%s1299_s9 + $0x8] sm:$0xff]  ;;  %v972_v16 = vld [vmem:[%s1289_s7 + $0x48] sm:$0xff]   ;;  %v974_v18 = vld [vmem:[%s1289_s7 + $0x40] sm:$0xff]  }
  0x58   : > { %v330_v13 = vld [vmem:[%s1283_s28 + $0x8] sm:$0xff]  ;;  %v975_v19 = vld [vmem:[%s1289_s7] sm:$0xff]   ;;  %v327_v20 = vld [vmem:[%s1299_s9] sm:$0xff] }
  0x59   : > { %848 = vmatpush3.bf16.msra.mxu0 %v963_v4  ;;  %v332_v14 = vpack.c.bf16 %v330_v13, %v328_v12  ;;  %v973_v17 = vld [vmem:[%s1289_s7 + $0x8] sm:$0xff]   ;;  %v329_v21 = vld [vmem:[%s1283_s28] sm:$0xff]  ;;  %v334_v29 = vld [vmem:[#allocation2 + $0x8] sm:$0xff] }
  0x5a   : > { %849 = vmatprep.subr.bf16.mxu0 %v964_v5  ;;  %v331_v22 = vpack.c.bf16 %v329_v21, %v327_v20  ;;  %v333_v24 = vld [vmem:[#allocation2] sm:$0xff] }
  0x5b   : > { %495 = vmatprep.mubr.bf16.mxu0 %v332_v14 }
  0x5d   : > { %850 = vmatpush3.bf16.msra.mxu0 %v965_v6 }
  0x5e   : > { %851 = vmatprep.subr.bf16.mxu0 %v966_v7 }
  0x61   : > { %852 = vmatpush3.bf16.msra.mxu0 %v967_v8 }
  0x62   : > { %853 = vmatprep.subr.bf16.mxu0 %v968_v9 }
  0x65   : > { %854 = vmatpush3.bf16.msra.mxu0 %v969_v10 }
  0x66   : > { %855 = vmatprep.subr.bf16.mxu0 %v970_v11 }
  0x69   : > { %856 = vmatpush3.bf16.msra.mxu0 %v971_v15 }
  0x6a   : > { %857 = vmatprep.subr.bf16.mxu0 %v972_v16 }
  0x6d   : > { %858 = vmatpush3.bf16.msra.mxu0 %v973_v17 }
  0x6e   : > { %859 = vmatprep.subr.bf16.mxu0 %v974_v18 }
  0x71   : > { %860 = vmatpush3.bf16.msra.mxu0 %v975_v19 }
  0x74   : > { %496 = vmatmul.mubr.bf16.vlgmr.msra.gmra.mxu0 %v331_v22 }
 0x134   : > { %v861_v23 = vpop.f32.mrf.mxu0 }
 0x136   : > { %v862_v25 = vpop.f32.mrf.mxu0 }
 0x137   : > { %v863_v26 = vadd.f32 %v862_v25, %v861_v23 }
 0x138   : > { %v864_v27 = vpop.f32.mrf.mxu0 }
 0x139   : > { %v504_v28 = vadd.f32 %v863_v26, %v333_v24 }
 0x13a   : > { %v865_v30 = vpop.f32.mrf.mxu0 }
 0x13b   : > { %506 = vst [vmem:[#allocation2] sm:$0xff] %v504_v28  ;;  %v866_v31 = vadd.f32 %v865_v30, %v864_v27  ;;  %511 = sbr.rel (%p827_p3) target bundleno = 920 (0x398), region = 60 }
 0x13d   : > { %v505_v32 = vadd.f32 %v866_v31, %v334_v29 }
 0x13f   : > { %507 = vst [vmem:[#allocation2 + $0x8] sm:$0xff] %v505_v32 }
 0x140   : > { %v976_v33 = vld [vmem:[%s1386_s4 + $0x38] sm:$0xff]   ;;  %v1117_v34 = vmov 0.0   ;;  %v977_v35 = vld [vmem:[%s1386_s4 + $0x30] sm:$0xff]   ;;  %vm1118_vm0 = vmmov 0   ;;  %v978_v36 = vld [vmem:[%s1386_s4 + $0x28] sm:$0xff]   ;;  %vm639_vm1 = vcmask 523264  }
 0x141   : > { %878 = vmatprep.subr.bf16.mxu0 %v1117_v34  ;;  %898 = vmatprep.subr.bf16.mxu1 %v1117_v34  ;;  %v979_v37 = vld [vmem:[%s1386_s4 + $0x20] sm:$0xff]   ;;  %v980_v38 = vld [vmem:[%s1386_s4 + $0x18] sm:$0xff]   ;;  %v981_v39 = vld [vmem:[%s1386_s4 + $0x10] sm:$0xff]   ;;  %vm702_vm2 = vcmask 64512  }
 0x142   : > { %879 = vmatpush3.bf16.msra.mxu0 %v976_v33  ;;  %894 = vmatprep.mubr.msk.bf16.mxu0 %vm1118_vm0, %v1117_v34  ;;  %v512_v40 = vld [vmem:[#allocation2] sm:$0xff]  ;;  %v982_v45 = vld [vmem:[%s1386_s4 + $0x8] sm:$0xff]  }
 0x143   : > { %880 = vmatprep.subr.bf16.mxu0 %v1117_v34  ;;  %900 = vmatprep.mubr.msk.bf16.mxu1 %vm1118_vm0, %v1117_v34  ;;  %v828_v42 = vld [vmem:[%s1385_s3] ss:$0 sm:$0xff] }
 0x144   : > { %v521_v43 = vadd.f32 %v828_v42, %v512_v40  ;;  %v983_v48 = vld [vmem:[%s1386_s4] sm:$0xff]  }
 0x145   : > { %v829_v51 = vld [vmem:[%s1387_s5] ss:$0 sm:$0xff] }
 0x146   : > { %881 = vmatpush3.bf16.msra.mxu0 %v977_v35  ;;  %v513_v41 = vld [vmem:[#allocation2 + $0x8] sm:$0xff]  ;;  %v523_v46 = vmax.f32 %v521_v43, 0.0 }
 0x147   : > { %882 = vmatprep.subr.bf16.mxu0 %v1117_v34  ;;  %v522_v44 = vadd.f32 %v828_v42, %v513_v41 }
 0x149   : > { %v524_v47 = vmax.f32 %v522_v44, 0.0 }
 0x14a   : > { %883 = vmatpush3.bf16.msra.mxu0 %v978_v36 }
 0x14b   : > { %884 = vmatprep.subr.bf16.mxu0 %v1117_v34  ;;  %v525_v49 = vpack.c.bf16 %v524_v47, %v523_v46 }
 0x14e   : > { %885 = vmatpush3.bf16.msra.mxu0 %v979_v37 }
 0x14f   : > { %886 = vmatprep.subr.bf16.mxu0 %v1117_v34 }
 0x152   : > { %887 = vmatpush3.bf16.msra.mxu0 %v980_v38 }
 0x153   : > { %888 = vmatprep.subr.bf16.mxu0 %v1117_v34 }
 0x156   : > { %889 = vmatpush3.bf16.msra.mxu0 %v981_v39 }
 0x157   : > { %890 = vmatprep.subr.bf16.mxu0 %v1117_v34 }
 0x15a   : > { %891 = vmatpush3.bf16.msra.mxu0 %v982_v45 }
 0x15b   : > { %892 = vmatprep.subr.bf16.mxu0 %v1117_v34 }
 0x15e   : > { %893 = vmatpush3.bf16.msra.mxu0 %v983_v48 }
 0x161   : > { %895 = vmatmul.mubr.bf16.vlgmr.msra.gmra.mxu0 %v525_v49 }
 0x221   : > { %v631_v50 = vpop.f32.mrf.mxu0 }
 0x222   : > { %v632_v54 = vadd.f32 %v829_v51, %v631_v50 }
 0x223   : > { %v896_v52 = vpop.f32.mrf.mxu0 }
 0x224   : > { %v638_v59 = vmul.f32 %v632_v54, %v632_v54 }
 0x225   : > { %v634_v53 = vpop.f32.mrf.mxu0 }
 0x226   : > { %v635_v55 = vadd.f32 %v829_v51, %v634_v53  ;;  %v640_v60 = vsel %vm639_vm1, %v638_v59, 0.0 }
 0x227   : > { %v897_v56 = vpop.f32.mrf.mxu0 }
 0x228   : > { %v646_v57 = vmul.f32 %v635_v55, %v635_v55 }
 0x22a   : > { %v647_v58 = vsel %vm639_vm1, %v646_v57, 0.0 }
 0x22b   : > { %648 = vadd.xlane.f32.xlu0 %v647_v58 }
 0x22f   : > { %641 = vadd.xlane.f32.xlu0 %v640_v60 }
 0x2b4   : > { %v649_v61 = vpop.xlane.xlu0 %648 }
 0x2b5   : > { %v650_v62 = vadd.f32 1e-12, %v649_v61 }
 0x2b7   : > { %984 = vrsqrt.f32 %v650_v62 }
 0x2b8   : > { %v642_v63 = vpop.xlane.xlu0 %641 }
 0x2b9   : > { %v643_v0 = vadd.f32 1e-12, %v642_v63 }
 0x2bb   : > { %986 = vrsqrt.f32 %v643_v0 }
 0x2c4   : > { %v985_v1 = vpop.eup %984 }
 0x2c5   : > { %v654_v2 = vmul.f32 %v985_v1, %v635_v55 }
 0x2c7   : > { %v655_v3 = vpack.c.bf16 %v654_v2, %v654_v2 }
 0x2c8   : > { %v987_v4 = vpop.eup %986 }
 0x2c9   : > { %v645_v5 = vmul.f32 5.0, %v987_v4  ;;  %v660_v6 = vsel %vm639_vm1, %v655_v3, 0 }
 0x2ca   : > { %899 = vmatpush3.bf16.xpose.msra.mxu1 %v660_v6 }
 0x2cb   : > { %v652_v7 = vmul.f32 %v645_v5, %v632_v54 }
 0x2cd   : > { %v653_v8 = vpack.c.bf16 %v652_v7, %v652_v7 }
 0x2d1   : > { %901 = vmatmul.mubr.msk.bf16.vlgmr.msra.gmra.mxu1 %vm639_vm1, %v653_v8 }
 0x391   : > { %v696_v9 = vpop.f32.mrf.mxu1 }
 0x392   : > { %703 = vst.msk [vmem:[#allocation8] sm:$0xff] %vm702_vm2, %v696_v9 }
 0x393   : > { %v902_v10 = vpop.f32.mrf.mxu1 }
 0x395   : > { %v699_v11 = vpop.f32.mrf.mxu1 }
 0x397   : > { %v903_v12 = vpop.f32.mrf.mxu1 }
 0x398 PF: > { %p920_p4 = scmp.eq.s32.totalorder %s1174_s25, 3  ;;  %s1119_s10 = smov [#allocation8]  }
 0x399   : > { %s711_s13 = sshll.u32 %s1119_s10, 4  ;;  %s712_s13 = int_to_ptr.vmem [resolvable:$true] %s711_s13 }
 0x39a   : > { %s1044_s17 = scalar_lea.vmem %s712_s13, 128  ;;  %p1051_p1 = scmp.lt.s32.totalorder %s712_s13, %s712_s13 }
 0x39b   : > { %p1045_p6 = scmp.ne.s32.totalorder %s712_s13, %s1044_s17  ;;  %p1052_p0 = scmp.lt.s32.totalorder %s1044_s17, %s1044_s17 }
 0x39d   : > { %p1046_p11 = pnand %p1045_p6, %p920_p4  ;;  %p1053_p2 = por %p1052_p0, %p1051_p1 }
 0x39f   : > { %p1047_p13 = pneg %p1046_p11 }
 0x3a1   : > { %p1054_p9 = pnand %p1053_p2, %p1047_p13 }
 0x3a3   : > { %1057 = shalt.err (!%p1054_p9)
}
 0x3a4   : > { %909 = dma.vmem_to_hbm [thread:$0]  (%p920_p4), %s712_s13, 128, %s1388_s6, [#allocation5]  }
 0x3a5   : > { %1093 = dma.done.wait (%p920_p4), [#allocation5], 128  }
 0x3a6   : > { %1095 = vsyncadd (%p920_p4), [#allocation5], 4294967168 }
 0x3a7 PF: > { %p20_p10 = scmp.ge.s32.totalorder %s1177_s26, 6   ;;  %s1396_s21 = smov %s1102_s22 }
 0x3a8   : > { %s1397_s22 = smov %s1106_s23  ;;  %s1398_s23 = smov %s1187_s29 }
 0x3a9   : > { %s1399_s24 = smov %s1177_s26  ;;  %22 = sbr.rel (!%p20_p10) target bundleno = 6 (0x6), region = 105 }
 0x3ae   :  { %724 = vsyncpa [#allocation4], 1 }
 0x3af   :  { %726 = vsyncpa [#allocation4 + $0x1], 1 }
 0x3b0   :  { %727 = vsyncpa [#allocation7], 1 }
 0x3b1   :  { %729 = vsyncpa [#allocation7 + $0x1], 1 }
 0x3b2   :  { %730 = vsyncpa [#allocation5], 1 }
 0x3b3   :  { %732 = vsyncpa [#allocation5 + $0x1], 1 }

</bundles_post_ra>
